<compile_context>
chip_gen: v7x
topology: tpu7x:2x2x1
jax: 0.10.0
libtpu: 0.0.40
codegen_flags: <defaults>
</compile_context>

<pallas_src>
import functools
from dataclasses import dataclass, field
from typing import Dict, List, Optional, Tuple

import jax
import jax.numpy as jnp
from jax.experimental import pallas as pl
from jax.experimental.pallas import tpu as pltpu


# ------------------------- tiling configuration --------------------------
_LANE = 128
_VMEM_CAP = 48 * 2**20   # scoped-VMEM ceiling; leaves headroom on v7x's 64 MiB part
_TN_MAX = 2048           # one-time vocab padding granularity for large vocabs
_TK_GRAN = 256           # one-time hidden padding granularity (NOT 1024)


def _round_up(x: int, m: int) -> int:
    return (x + m - 1) // m * m


@functools.lru_cache(maxsize=1)
def _hw_profile() -> Tuple[int, int, int]:
    """(tm_pref, tn_pref, tk_pref) per TPU generation (roofline-tuned)."""
    try:
        kind = jax.devices()[0].device_kind.lower()
    except Exception:
        kind = ""
    if ("v5e" in kind) or ("v5 lite" in kind) or ("v5lite" in kind):
        # v5e: tm=512/tn=1024 -> ~341 FLOP/byte vs ~240 needed; bigger only wastes pad.
        return 512, 1024, 512
    # v6e / v7x / default: ~655/620 FLOP/byte needed -> tm=1024, tn=2048, tk=512.
    return 1024, 2048, 512


def _padded_vocab(v: int) -> int:
    # Pad vocab once at weight-build time so the lane-dense tn tile always divides it.
    return _round_up(v, _TN_MAX) if v >= _TN_MAX else _round_up(v, _LANE)


def _padded_hidden(k: int) -> int:
    # Pad hidden once to 256 only; common hiddens (1280/2560/4096/5120/...) stay exact.
    return _round_up(k, _TK_GRAN) if k >= _TK_GRAN else k


def _pick_tm(max_m: int, tm_pref: int) -> int:
    need = _round_up(max(max_m, 1), 16)          # bf16 sublane packing
    for cand in (128, 256, 512, 1024):           # fixed set -> stable jit cache keys
        if cand >= need:
            return min(cand, tm_pref)
    return tm_pref


def _pick_tn(vp: int, tn_pref: int) -> int:
    if vp <= tn_pref:
        return vp                                # full-extent vocab tile (small vocab)
    for cand in (tn_pref, 1024, 512, 256, 128):
        if vp % cand == 0:
            return cand
    return _LANE


def _pick_tk(kp: int, tk_pref: int) -> int:
    if kp <= tk_pref:
        return kp                                # full-extent hidden tile
    for cand in (tk_pref, 256, 128):
        if kp % cand == 0:
            return cand
    return kp


# ----------------------------- Pallas kernel ------------------------------
#
# Grouped LM head:  logits[row-tile i] = x_tile @ W_T[group_id[i]]
#   x       : [Mp, Kp]       activations, groups concatenated, row-tile aligned (bf16)
#   w_stack : [G, Kp, Vp]    per-adapter heads, pre-transposed once at registration
#   gid     : [Mp // tm] i32 adapter index per row tile (scalar-prefetched to SMEM)
# The output block index (i, j) is constant across the k axis, so o_ref stays resident
# in VMEM for the whole reduction and is accumulated in place (no f32 scratch).

def _lm_head_kernel(gid_ref, x_ref, w_ref, o_ref):
    part = jnp.dot(x_ref[...], w_ref[...], preferred_element_type=jnp.float32)

    @pl.when(pl.program_id(2) == 0)
    def _():
        o_ref[...] = part

    @pl.when(pl.program_id(2) > 0)
    def _():
        o_ref[...] += part


@functools.partial(jax.jit, static_argnames=("tm", "tn", "tk"))
def _grouped_lm_head_pallas(gid, x, w_stack, *, tm, tn, tk):
    Mp, Kp = x.shape
    G, Kw, Vp = w_stack.shape
    assert Kw == Kp and Mp % tm == 0 and Vp % tn == 0 and Kp % tk == 0

    grid = (Mp // tm, Vp // tn, Kp // tk)

    x_b = jnp.dtype(x.dtype).itemsize
    w_b = jnp.dtype(w_stack.dtype).itemsize
    # double-buffered x + w tiles, double-buffered resident f32 output tile
    est = 2 * tm * tk * x_b + 2 * tk * tn * w_b + 2 * tm * tn * 4
    vmem_limit = int(min(_VMEM_CAP, max(32 * 2**20, est + 8 * 2**20)))

    return pl.pallas_call(
        _lm_head_kernel,
        out_shape=jax.ShapeDtypeStruct((Mp, Vp), jnp.float32),
        grid_spec=pltpu.PrefetchScalarGridSpec(
            num_scalar_prefetch=1,
            grid=grid,
            in_specs=[
                pl.BlockSpec((tm, tk), lambda i, j, k, gid_ref: (i, k)),
                pl.BlockSpec((None, tk, tn),
                             lambda i, j, k, gid_ref: (gid_ref[i], k, j)),
            ],
            out_specs=pl.BlockSpec((tm, tn), lambda i, j, k, gid_ref: (i, j)),
        ),
        compiler_params=pltpu.CompilerParams(
            dimension_semantics=("parallel", "parallel", "arbitrary"),
            vmem_limit_bytes=vmem_limit,
        ),
    )(gid, x, w_stack)


def _run_grouped_head(flat_x, spans, gids, w_stack, vocab, hidden):
    """flat_x: [M_total, hidden] activations; spans: (start_row, n_rows) per group;
    gids: adapter index per group; w_stack: [G, Kp, Vp] packed heads.
    One Pallas launch for all groups; returns per-group float32 logits [n_rows, vocab]."""
    G, Kp, Vp = w_stack.shape
    cdtype = w_stack.dtype
    tm_pref, tn_pref, tk_pref = _hw_profile()

    sizes = [int(m) for (_, m) in spans]
    max_m = max(sizes) if sizes else 0
    if max_m == 0:
        return [jnp.zeros((0, vocab), jnp.float32) for _ in spans]

    tm = _pick_tm(max_m, tm_pref)
    tn = _pick_tn(Vp, tn_pref)
    tk = _pick_tk(Kp, tk_pref)

    # One pass over the activations: cast to compute dtype + pad hidden once.
    xc = flat_x.astype(cdtype)
    if Kp > hidden:
        xc = jnp.pad(xc, ((0, 0), (0, Kp - hidden)))

    # Row-tile-align each group so one scalar-prefetched gid per tile drives the
    # weight index_map.  Already-aligned groups pass through without extra padding.
    pieces, gid_list, out_spans, off = [], [], [], 0
    for (start, m), g in zip(spans, gids):
        mp = _round_up(m, tm) if m else 0
        piece = jax.lax.slice_in_dim(xc, start, start + m, axis=0)
        if mp > m:
            piece = jnp.pad(piece, ((0, mp - m), (0, 0)))
        pieces.append(piece)
        gid_list += [g] * (mp // tm)
        out_spans.append((off, m))
        off += mp

    x_all = pieces[0] if len(pieces) == 1 else jnp.concatenate(pieces, axis=0)
    gid = jnp.asarray(gid_list, dtype=jnp.int32)

    logits = _grouped_lm_head_pallas(gid, x_all, w_stack, tm=tm, tn=tn, tk=tk)

    # Per-group results; skip any crop when the group IS the un-padded kernel output
    # (avoids re-copying the f32 logits through HBM in the common single-group case).
    mp_total = int(x_all.shape[0])
    outs = []
    for (o, m) in out_spans:
        if len(out_spans) == 1 and m == mp_total and Vp == vocab:
            outs.append(logits)
        elif Vp == vocab:
            outs.append(jax.lax.slice_in_dim(logits, o, o + m, axis=0))
        else:
            outs.append(jax.lax.slice(logits, (o, 0), (o + m, vocab)))
    return outs


# --------------------------- module equivalent ----------------------------

@dataclass
class LoraBatchConfig:
    adapter_name_: str
    batch_start_idx_: int
    batch_end_idx_: int


@dataclass
class LLMModelInput:
    batch_configs_: List[LoraBatchConfig] = field(default_factory=list)


@dataclass
class LLMModelOutput:
    adapter_name: str
    logits: jax.Array
    loss_fn_: object = None


class CasualOutputLayer:
    """JAX stand-in for moe_peft's CasualOutputLayer: logits = (x @ W.T).float().

    The head keeps the PyTorch [vocab, hidden] layout at registration; it is cast to
    the compute dtype (bf16), zero-padded and transposed to [Kp, Vp] exactly once when
    packed (native MXU feed, lane-dense vocab axis).  No per-call weight copies.
    """
    # TODO(synk): int8 (v5e/v6e) / fp8 (v7x) weight path with in-kernel per-column
    # dequant to halve the dominant weight stream.

    def __init__(self, weight, compute_dtype=jnp.bfloat16):
        weight = jnp.asarray(weight)
        vocab, hidden = weight.shape
        self.weight = weight
        self.vocab_size_ = int(vocab)
        self.hidden_ = int(hidden)
        self.compute_dtype_ = compute_dtype
        self.vp_ = _padded_vocab(self.vocab_size_)
        self.kp_ = _padded_hidden(self.hidden_)
        self._packed: Optional[jax.Array] = None   # lazy [1, Kp, Vp] for standalone use

    def pack_2d(self) -> jax.Array:
        """Cast + pad + transpose the head once: [vocab, hidden] -> [Kp, Vp]."""
        w = self.weight.astype(self.compute_dtype_)
        if (self.vp_, self.kp_) != (self.vocab_size_, self.hidden_):
            w = jnp.pad(w, ((0, self.vp_ - self.vocab_size_),
                            (0, self.kp_ - self.hidden_)))
        return jnp.transpose(w)

    def forward(self, data: jax.Array) -> jax.Array:
        if self._packed is None:
            self._packed = self.pack_2d()[None]    # built once, only for standalone calls
        b, s, h = data.shape
        flat = data.reshape(b * s, h)
        (logits,) = _run_grouped_head(flat, [(0, b * s)], [0], self._packed,
                                      self.vocab_size_, self.hidden_)
        return logits.reshape(b, s, self.vocab_size_)

    def loss(self, *args, **kwargs):
        # TODO(synk): cross-entropy loss (ideally fused into the kernel epilogue to skip
        # the f32 logits HBM round-trip) is not exercised by forward(); left as a stub.
        return None


class OutputLayer:
    def __init__(self):
        self.layers_: Dict[str, CasualOutputLayer] = {}
        self._stack_names: Optional[Tuple[str, ...]] = None
        self._stack: Optional[jax.Array] = None
        self._stack_idx: Dict[str, int] = {}

    def _stacked_weights(self):
        """Cache a [G, Kp, Vp] stack of all registered heads (built once from the raw
        weights; no per-head packed duplicates are kept alongside the stack)."""
        names = tuple(sorted(self.layers_.keys()))
        if not names:
            return None
        sigs = {(self.layers_[n].vocab_size_, self.layers_[n].hidden_,
                 jnp.dtype(self.layers_[n].compute_dtype_)) for n in names}
        if len(sigs) != 1:
            return None  # heterogeneous heads -> per-adapter fallback path
        if self._stack_names != names:
            self._stack = jnp.stack([self.layers_[n].pack_2d() for n in names], axis=0)
            self._stack_idx = {n: i for i, n in enumerate(names)}
            self._stack_names = names
        return self._stack, self._stack_idx

    def forward(self, data: jax.Array, input_args: LLMModelInput) -> List[LLMModelOutput]:
        configs = input_args.batch_configs_
        for cfg in configs:
            assert cfg.adapter_name_ != "" and cfg.adapter_name_ in self.layers_
        if not configs:
            return []

        stacked = self._stacked_weights()
        if stacked is None:
            # Heads differ in shape/dtype: one kernel launch per adapter slice.
            return [
                LLMModelOutput(
                    adapter_name=c.adapter_name_,
                    logits=self.layers_[c.adapter_name_].forward(
                        data[c.batch_start_idx_:c.batch_end_idx_]),
                    loss_fn_=self.layers_[c.adapter_name_].loss)
                for c in configs
            ]

        w_stack, name_to_idx = stacked
        b, s, h = data.shape
        ref_layer = self.layers_[configs[0].adapter_name_]
        vocab, hidden = ref_layer.vocab_size_, ref_layer.hidden_

        flat = data.reshape(b * s, h)
        spans, gids = [], []
        for c in configs:
            rows = c.batch_end_idx_ - c.batch_start_idx_
            spans.append((c.batch_start_idx_ * s, rows * s))
            gids.append(name_to_idx[c.adapter_name_])

        per_group = _run_grouped_head(flat, spans, gids, w_stack, vocab, hidden)

        outputs = []
        for c, logits in zip(configs, per_group):
            rows = c.batch_end_idx_ - c.batch_start_idx_
            layer = self.layers_[c.adapter_name_]
            outputs.append(LLMModelOutput(
                adapter_name=c.adapter_name_,
                logits=logits.reshape(rows, s, vocab),
                loss_fn_=layer.loss))
        return outputs


# --------------------------------- demo -----------------------------------

if __name__ == "__main__":
    batch, seq, hidden, vocab = 4, 8, 32, 256

    key = jax.random.PRNGKey(0)
    k_data, k_w0, k_w1 = jax.random.split(key, 3)

    data = jax.random.normal(k_data, (batch, seq, hidden), dtype=jnp.float32)
    w_a = jax.random.normal(k_w0, (vocab, hidden), dtype=jnp.float32) / jnp.sqrt(hidden)
    w_b = jax.random.normal(k_w1, (vocab, hidden), dtype=jnp.float32) / jnp.sqrt(hidden)

    output_layer = OutputLayer()
    output_layer.layers_["adapter_a"] = CasualOutputLayer(w_a)
    output_layer.layers_["adapter_b"] = CasualOutputLayer(w_b)

    input_args = LLMModelInput(batch_configs_=[
        LoraBatchConfig("adapter_a", 0, 2),
        LoraBatchConfig("adapter_b", 2, 4),
    ])

    outs = output_layer.forward(data, input_args)
    for o in outs:
        jax.block_until_ready(o.logits)

    # references with the same precision policy (bf16 operands, f32 accumulation)
    xb = data.astype(jnp.bfloat16)
    ref_a = jnp.einsum("bsh,vh->bsv", xb[0:2], w_a.astype(jnp.bfloat16),
                       preferred_element_type=jnp.float32)
    ref_b = jnp.einsum("bsh,vh->bsv", xb[2:4], w_b.astype(jnp.bfloat16),
                       preferred_element_type=jnp.float32)

    assert outs[0].adapter_name == "adapter_a" and outs[1].adapter_name == "adapter_b"
    assert outs[0].logits.shape == (2, seq, vocab) and outs[0].logits.dtype == jnp.float32
    assert outs[1].logits.shape == (2, seq, vocab) and outs[1].logits.dtype == jnp.float32
    assert jnp.allclose(outs[0].logits, ref_a, atol=2e-2, rtol=2e-2)
    assert jnp.allclose(outs[1].logits, ref_b, atol=2e-2, rtol=2e-2)

    # per-adapter API also runs through the same grouped kernel (G=1 path)
    single = output_layer.layers_["adapter_a"].forward(data[0:2])
    jax.block_until_ready(single)
    assert jnp.allclose(single, ref_a, atol=2e-2, rtol=2e-2)

    print("KERNEL_OK")
</pallas_src>

<mosaic_0001>
module attributes {stable_mosaic.version = 11 : i64} {
  func.func @_lm_head_kernel(%arg0: i32, %arg1: i32, %arg2: i32, %arg3: memref<2xi32, #tpu.memory_space<smem>>, %arg4: memref<128x32xbf16, #tpu.memory_space<vmem>>, %arg5: memref<1x32x256xbf16, #tpu.memory_space<vmem>>, %arg6: memref<128x256xf32, #tpu.memory_space<vmem>>) attributes {dimension_semantics = [#tpu.dimension_semantics<parallel>, #tpu.dimension_semantics<parallel>, #tpu.dimension_semantics<arbitrary>], iteration_bounds = array<i64: 2, 1, 1>, scalar_prefetch = 1 : i64, scratch_operands = 0 : i64, tpu.core_type = #tpu.core_type<tc>, window_params = [{transform_indices = @transform_0, window_bounds = array<i64: 128, 32>}, {transform_indices = @transform_1, window_bounds = array<i64: 1, 32, 256>}, {transform_indices = @transform_2, window_bounds = array<i64: 128, 256>}]} {
    %c0 = arith.constant 0 : index
    %c0_0 = arith.constant 0 : index
    %0 = vector.load %arg4[%c0, %c0_0] : memref<128x32xbf16, #tpu.memory_space<vmem>>, vector<128x32xbf16>
    %c0_1 = arith.constant 0 : index
    %c0_2 = arith.constant 0 : index
    %c0_3 = arith.constant 0 : index
    %1 = vector.load %arg5[%c0_1, %c0_2, %c0_3] : memref<1x32x256xbf16, #tpu.memory_space<vmem>>, vector<1x32x256xbf16>
    %2 = vector.shape_cast %1 : vector<1x32x256xbf16> to vector<32x256xbf16>
    %cst = arith.constant dense<0.000000e+00> : vector<128x256xf32>
    %3 = tpu.matmul %0, %2, %cst {dimension_numbers = #tpu.dot_dimension_numbers<[1], [0], [0], [1], [0, 0, 1, 1], [], []>} : vector<128x32xbf16>, vector<32x256xbf16>, vector<128x256xf32> -> vector<128x256xf32>
    %c0_i32 = arith.constant 0 : i32
    %4 = arith.cmpi eq, %arg2, %c0_i32 : i32
    %5 = arith.extui %4 : i1 to i32
    %c0_i32_4 = arith.constant 0 : i32
    %6 = arith.cmpi ne, %5, %c0_i32_4 : i32
    scf.if %6 {
      %c0_7 = arith.constant 0 : index
      %c0_8 = arith.constant 0 : index
      %10 = vector.load %arg6[%c0_7, %c0_8] : memref<128x256xf32, #tpu.memory_space<vmem>>, vector<128x256xf32>
      tpu.vector_store %arg6[%c0_7, %c0_8], %3 {strides = array<i32>} : memref<128x256xf32, #tpu.memory_space<vmem>>, vector<128x256xf32>,
    } else {
    }
    %c0_i32_5 = arith.constant 0 : i32
    %7 = arith.cmpi sgt, %arg2, %c0_i32_5 : i32
    %8 = arith.extui %7 : i1 to i32
    %c0_i32_6 = arith.constant 0 : i32
    %9 = arith.cmpi ne, %8, %c0_i32_6 : i32
    scf.if %9 {
      %c0_7 = arith.constant 0 : index
      %c0_8 = arith.constant 0 : index
      %10 = vector.load %arg6[%c0_7, %c0_8] : memref<128x256xf32, #tpu.memory_space<vmem>>, vector<128x256xf32>
      %11 = arith.addf %10, %3 : vector<128x256xf32>
      %c0_9 = arith.constant 0 : index
      %c0_10 = arith.constant 0 : index
      %12 = vector.load %arg6[%c0_9, %c0_10] : memref<128x256xf32, #tpu.memory_space<vmem>>, vector<128x256xf32>
      tpu.vector_store %arg6[%c0_9, %c0_10], %11 {strides = array<i32>} : memref<128x256xf32, #tpu.memory_space<vmem>>, vector<128x256xf32>,
    } else {
    }
    return
  }
  func.func @transform_0(%arg0: i32, %arg1: i32, %arg2: i32, %arg3: memref<2xi32, #tpu.memory_space<smem>>) -> (i32, i32) {
    %c0_i32 = arith.constant 0 : i32
    return %arg0, %arg2 : i32, i32
  }
  func.func @transform_1(%arg0: i32, %arg1: i32, %arg2: i32, %arg3: memref<2xi32, #tpu.memory_space<smem>>) -> (i32, i32, i32) {
    %0 = arith.index_cast %arg0 : i32 to index
    %1 = memref.load %arg3[%0] : memref<2xi32, #tpu.memory_space<smem>>
    %c0_i32 = arith.constant 0 : i32
    return %1, %arg2, %arg1 : i32, i32, i32
  }
  func.func @transform_2(%arg0: i32, %arg1: i32, %arg2: i32, %arg3: memref<2xi32, #tpu.memory_space<smem>>) -> (i32, i32) {
    %c0_i32 = arith.constant 0 : i32
    return %arg0, %arg1 : i32, i32
  }
}

</mosaic_0001>

<bundles_post_ra>
// kernel: _grouped_lm_head_pallas.1
= control target key start
LH: loop header
LB: loop body
LE: loop exit
PB: predicated region body
PF: predicated region fallthrough
CT: control target
= control target key end

     0   :  { %s1135_s0 = inlined_call_operand.vmem [shape: s32[2], index: 0, kind: input, shape index: {}]   ;;  %s1136_s1 = inlined_call_operand.vmem [shape: bf16[256,32], index: 1, kind: input, shape index: {}]   ;;  %s1137_s2 = inlined_call_operand.vmem [shape: bf16[2,32,256], index: 2, kind: input, shape index: {}]   ;;  %s1138_s3 = inlined_call_operand.hbm [shape: f32[256,256], index: 3, kind: output, shape index: {}]  }
   0x1   :  { %s8_s14 = sshll.u32 %s1135_s0, 4  ;;  %s9_s14 = int_to_ptr.vmem [resolvable:$true] %s8_s14 }
   0x2   :  { %s838_s15 = scalar_lea.vmem %s9_s14, 16  ;;  %p843_p1 = scmp.lt.s32.totalorder %s9_s14, %s9_s14 }
   0x3   :  { %p839_p0 = scmp.ne.s32.totalorder %s9_s14, %s838_s15  ;;  %p844_p2 = scmp.lt.s32.totalorder %s838_s15, %s838_s15 }
   0x5   :  { %p845_p3 = por %p844_p2, %p843_p1 }
   0x7   :  { %p846_p4 = pnand %p845_p3, %p839_p0 }
   0x9   :  { %849 = shalt.err (!%p846_p4)  }
   0xa   :  { %s932_s16 = smov [#allocation3]  }
   0xb   :  { %11 = dma.vmem_to_smem %s9_s14, 16, %s932_s16, [#allocation2] }
   0xc   :  { %902 = dma.done.wait [#allocation2], 16 }
   0xd   :  { %903 = vsyncadd [#allocation2], 4294967280 }
   0xe   :  { %13 = sfence }
   0xf   :  { %14 = vsyncpa [#allocation5], 0 }
  0x10   :  { %16 = vsyncpa [#allocation5 + $0x1], 0  ;;  %s960_s17 = smov 0   ;;  %s962_s18 = smov 0  }
  0x11   :  { %s964_s0 = smov 0   ;;  %s966_s19 = smov 0  }
  0x12   :  { %s968_s20 = smov 0   ;;  %s970_s21 = smov 0  }
  0x13 LB: > { %s722_s22 = sadd.s32 4294967295, %s930_s21   ;;  %s723_s23 = sadd.s32 4294967294, %s930_s21   ;;  %s930_s21 = sphi %s970_s21, %s22_s21   ;;  %s926_s20 = sphi %s968_s20, %s1145_s20   ;;  %s922_s19 = sphi %s966_s19, %s1144_s19   ;;  %s918_s0 = sphi %s964_s0, %s1143_s0   ;;  %s914_s18 = sphi %s962_s18, %s1142_s18   ;;  %s910_s17 = sphi %s960_s17, %s1141_s17  }
  0x14   : > { %s41_s24 = sadd.s32 1, %s926_s20  ;;  %s110_s25 = sadd.s32 1, %s918_s0 }
  0x15   : > { %p43_p5 = scmp.ge.s32.totalorder %s41_s24, 2  ;;  %p120_p6 = scmp.ne.s32.totalorder %s918_s0, %s914_s18 }
  0x16   : > { %p121_p7 = scmp.eq.s32.totalorder %s722_s22, 1  ;;  %p126_p8 = scmp.ne.s32.totalorder %s914_s18, %s910_s17 }
  0x17   : > { %s1147_s24 = smov (%p43_p5, %s41_s24), 0  ;;  %p127_p10 = scmp.eq.s32.totalorder %s723_s23, 1 }
  0x18   : > { %p1000_p9 = por %p121_p7, %p120_p6  ;;  %s105_s27 = ssub.s32 %s926_s20, %s1147_s24 }
  0x19   : > { %p726_p11 = scmp.ge.s32.totalorder %s930_s21, 1  ;;  %p108_p12 = scmp.eq.s32.totalorder %s105_s27, 0 }
  0x1a   : > { %p1007_p13 = por %p127_p10, %p126_p8  ;;  %p178_p0 = scmp.lt.s32.totalorder %s930_s21, 3 }
  0x1b   : > { %s1013_s29 = scalar_select %p108_p12, %s918_s0, %s110_s25  }
  0x1c   : > { %p179_p1 = pnand %p726_p11, %p178_p0 }
  0x1d   : > { %s227_s30 = sld [smem:[#allocation3 + %s922_s19]] (!%p179_p1)  ;;  %s728_s4 = sshll.u32 (!%p179_p1), %s922_s19, 4  ;;  %v933_v0 = vmov (!%p179_p1), 0   ;;  %vm328_vm0 = vcmask (!%p179_p1), 261120  }
  0x1e   : > { %182 = sbr.rel (%p179_p1) target bundleno = 303 (0x12f), region = 28  ;;  %385 = vmatprep.mubr.bf16.mxu0 (!%p179_p1), %v933_v0  ;;  %425 = vmatprep.mubr.bf16.mxu1 (!%p179_p1), %v933_v0  ;;  %p219_p2 = scmp.lt.s32.totalorder (!%p179_p1), %s728_s4, 31 }
  0x1f   : > { %s215_s13 = sand.u32 (!%p179_p1), 1, %s914_s18   ;;  %s760_s16 = sshll.u32 (!%p179_p1), %s922_s19, 12 }
  0x20   : > { %s727_s14 = sshll.u32 (!%p179_p1), %s215_s13, 8  ;;  %s1077_s27 = scalar_lea.hbm (!%p179_p1), %s1138_s3, %s760_s16 }
  0x21   : > { %s1044_s15 = scalar_lea.vmem (!%p179_p1), [#allocation4], %s727_s14  ;;  %s1089_s19 = scalar_lea.sflag (!%p179_p1), [#allocation5], %s215_s13 }
  0x22   : > { %s619_s22 = sshll.u32 (!%p179_p1), %s1044_s15, 4  ;;  %s1079_s22 = int_to_ptr.vmem [resolvable:$true] %s619_s22 }
  0x23   : > { %p230_p3 = scmp.lt.s32.totalorder (!%p179_p1), %s227_s30, 1 }
  0x25   : > { %s1149_s4 = smov (!%p219_p2, %s728_s4), 31  ;;  %s1151_s30 = smov (!%p230_p3, %s227_s30), 1 }
  0x26   : > { %s729_s5 = sshll.u32 %s1149_s4, 2  ;;  %s758_s9 = sshll.u32 %s1151_s30, 5 }
  0x27   : > { %s1020_s8 = scalar_lea.vmem %s1136_s1, %s729_s5  ;;  %s241_s12 = scalar_lea.vmem %s1137_s2, %s758_s9 }
  0x28   : > { %v824_v1 = vld [vmem:[%s241_s12 + $0x4] ss:$8 sps:$4 sm:$0xff]   ;;  %v826_v2 = vld [vmem:[%s241_s12] ss:$8 sps:$4 sm:$0xff]   ;;  %v827_v3 = vld [vmem:[%s241_s12 + $0x14] ss:$8 sps:$4 sm:$0xff]  }
  0x29   : > { %353 = vmatprep.subr.bf16.mxu0 %v824_v1  ;;  %761 = vmatprep.subr.bf16.mxu1 %v824_v1  ;;  %v829_v4 = vld [vmem:[%s241_s12 + $0x10] ss:$8 sps:$4 sm:$0xff]   ;;  %v830_v5 = vld [vmem:[%s1020_s8] sm:$0xff]   ;;  %v832_v7 = vld [vmem:[%s1020_s8 + $0x8] sm:$0xff]   ;;  %s850_s30 = scalar_lea.vmem %s1079_s22, 4096  ;;  %s934_s4 = smov [#allocation4]  }
  0x2a   : > { %354 = vmatpush1.bf16.msra.mxu0 %v826_v2  ;;  %763 = vmatpush1.bf16.msra.mxu1 %v826_v2  ;;  %v831_v6 = vld [vmem:[%s1020_s8 + $0x20] sm:$0xff]   ;;  %v833_v8 = vld [vmem:[%s1020_s8 + $0x28] sm:$0xff]   ;;  %v834_v9 = vld [vmem:[%s1020_s8 + $0x10] sm:$0xff]   ;;  %p851_p4 = scmp.ne.s32.totalorder %s1079_s22, %s850_s30  ;;  %s854_s5 = sshll.u32 %s934_s4, 4  ;;  %s855_s5 = int_to_ptr.vmem [resolvable:$false] %s854_s5 }
  0x2b   : > { %355 = vmatprep.subr.bf16.mxu0 %v827_v3  ;;  %762 = vmatprep.subr.bf16.mxu1 %v827_v3  ;;  %v835_v10 = vld [vmem:[%s1020_s8 + $0x30] sm:$0xff]   ;;  %v836_v11 = vld [vmem:[%s1020_s8 + $0x18] sm:$0xff]   ;;  %s856_s6 = scalar_lea.vmem %s855_s5, 8192  ;;  %p857_p7 = scmp.lt.s32.totalorder %s1079_s22, %s855_s5 }
  0x2c   : > { %v837_v12 = vld [vmem:[%s1020_s8 + $0x38] sm:$0xff]   ;;  %p852_p5 = pnand %p851_p4, %p1000_p9  ;;  %p858_p8 = scmp.lt.s32.totalorder %s856_s6, %s850_s30 }
  0x2e   : > { %356 = vmatpush1.bf16.msra.mxu0 %v829_v4  ;;  %764 = vmatpush1.bf16.msra.mxu1 %v829_v4  ;;  %p853_p6 = pneg %p852_p5  ;;  %p859_p10 = por %p858_p8, %p857_p7 }
  0x30   : > { %p860_p11 = pnand %p859_p10, %p853_p6 }
  0x31   : > { %744 = vmatmul.mubr.msk.bf16.vlgmr.msra.gmra.mrb[0].mxu0 %vm328_vm0, %v830_v5  ;;  %748 = vmatmul.mubr.msk.bf16.vlgmr.msra.gmra.mrb[0].mxu1 %vm328_vm0, %v831_v6 }
  0x32   : > { %395 = vmatprep.mubr.bf16.mxu0 %v933_v0  ;;  %435 = vmatprep.mubr.bf16.mxu1 %v933_v0 }
  0x39   : > { %745 = vmatmul.mubr.msk.bf16.gmra.mrb[4].mxu0 %vm328_vm0, %v832_v7  ;;  %749 = vmatmul.mubr.msk.bf16.gmra.mrb[4].mxu1 %vm328_vm0, %v833_v8 }
  0x3a   : > { %405 = vmatprep.mubr.bf16.mxu0 %v933_v0  ;;  %445 = vmatprep.mubr.bf16.mxu1 %v933_v0 }
  0x41   : > { %746 = vmatmul.mubr.msk.bf16.gmra.mrb[8].mxu0 %vm328_vm0, %v834_v9  ;;  %750 = vmatmul.mubr.msk.bf16.gmra.mrb[8].mxu1 %vm328_vm0, %v835_v10 }
  0x42   : > { %415 = vmatprep.mubr.bf16.mxu0 %v933_v0  ;;  %455 = vmatprep.mubr.bf16.mxu1 %v933_v0 }
  0x49   : > { %747 = vmatmul.mubr.msk.bf16.gmra.mrb[12].mxu0 %vm328_vm0, %v836_v11  ;;  %751 = vmatmul.mubr.msk.bf16.gmra.mrb[12].mxu1 %vm328_vm0, %v837_v12 }
 0x104   : > { %v387_v13 = vpop.f32.mrb[0].mxu0  ;;  %v427_v14 = vpop.f32.mrb[0].mxu1 }
 0x105   : > { %470 = vst [vmem:[%s1044_s15] sm:$0xff] %v387_v13  ;;  %486 = vst [vmem:[%s1044_s15 + $0x80] sm:$0xff] %v427_v14  ;;  %v389_v15 = vpop.f32.mrb[1].mxu0  ;;  %v429_v16 = vpop.f32.mrb[1].mxu1 }
 0x106   : > { %471 = vst [vmem:[%s1044_s15 + $0x8] sm:$0xff] %v389_v15  ;;  %487 = vst [vmem:[%s1044_s15 + $0x88] sm:$0xff] %v429_v16  ;;  %v391_v17 = vpop.f32.mrb[2].mxu0  ;;  %v431_v18 = vpop.f32.mrb[2].mxu1 }
 0x107   : > { %472 = vst [vmem:[%s1044_s15 + $0x10] sm:$0xff] %v391_v17  ;;  %488 = vst [vmem:[%s1044_s15 + $0x90] sm:$0xff] %v431_v18  ;;  %v393_v19 = vpop.f32.mrb[3].mxu0  ;;  %v433_v20 = vpop.f32.mrb[3].mxu1 }
 0x108   : > { %473 = vst [vmem:[%s1044_s15 + $0x18] sm:$0xff] %v393_v19  ;;  %489 = vst [vmem:[%s1044_s15 + $0x98] sm:$0xff] %v433_v20 }
 0x10c   : > { %v397_v21 = vpop.f32.mrb[4].mxu0  ;;  %v437_v22 = vpop.f32.mrb[4].mxu1 }
 0x10d   : > { %474 = vst [vmem:[%s1044_s15 + $0x20] sm:$0xff] %v397_v21  ;;  %490 = vst [vmem:[%s1044_s15 + $0xa0] sm:$0xff] %v437_v22  ;;  %v399_v23 = vpop.f32.mrb[5].mxu0  ;;  %v439_v24 = vpop.f32.mrb[5].mxu1 }
 0x10e   : > { %475 = vst [vmem:[%s1044_s15 + $0x28] sm:$0xff] %v399_v23  ;;  %491 = vst [vmem:[%s1044_s15 + $0xa8] sm:$0xff] %v439_v24  ;;  %v401_v25 = vpop.f32.mrb[6].mxu0  ;;  %v441_v26 = vpop.f32.mrb[6].mxu1 }
 0x10f   : > { %476 = vst [vmem:[%s1044_s15 + $0x30] sm:$0xff] %v401_v25  ;;  %492 = vst [vmem:[%s1044_s15 + $0xb0] sm:$0xff] %v441_v26  ;;  %v403_v27 = vpop.f32.mrb[7].mxu0  ;;  %v443_v28 = vpop.f32.mrb[7].mxu1 }
 0x110   : > { %477 = vst [vmem:[%s1044_s15 + $0x38] sm:$0xff] %v403_v27  ;;  %493 = vst [vmem:[%s1044_s15 + $0xb8] sm:$0xff] %v443_v28 }
 0x114   : > { %v407_v29 = vpop.f32.mrb[8].mxu0  ;;  %v447_v30 = vpop.f32.mrb[8].mxu1 }
 0x115   : > { %478 = vst [vmem:[%s1044_s15 + $0x40] sm:$0xff] %v407_v29  ;;  %494 = vst [vmem:[%s1044_s15 + $0xc0] sm:$0xff] %v447_v30  ;;  %v409_v31 = vpop.f32.mrb[9].mxu0  ;;  %v449_v32 = vpop.f32.mrb[9].mxu1 }
 0x116   : > { %479 = vst [vmem:[%s1044_s15 + $0x48] sm:$0xff] %v409_v31  ;;  %495 = vst [vmem:[%s1044_s15 + $0xc8] sm:$0xff] %v449_v32  ;;  %v411_v33 = vpop.f32.mrb[10].mxu0  ;;  %v451_v34 = vpop.f32.mrb[10].mxu1 }
 0x117   : > { %480 = vst [vmem:[%s1044_s15 + $0x50] sm:$0xff] %v411_v33  ;;  %496 = vst [vmem:[%s1044_s15 + $0xd0] sm:$0xff] %v451_v34  ;;  %v413_v35 = vpop.f32.mrb[11].mxu0  ;;  %v453_v36 = vpop.f32.mrb[11].mxu1 }
 0x118   : > { %481 = vst [vmem:[%s1044_s15 + $0x58] sm:$0xff] %v413_v35  ;;  %497 = vst [vmem:[%s1044_s15 + $0xd8] sm:$0xff] %v453_v36 }
 0x11c   : > { %v417_v37 = vpop.f32.mrb[12].mxu0  ;;  %v457_v38 = vpop.f32.mrb[12].mxu1 }
 0x11d   : > { %482 = vst [vmem:[%s1044_s15 + $0x60] sm:$0xff] %v417_v37  ;;  %498 = vst [vmem:[%s1044_s15 + $0xe0] sm:$0xff] %v457_v38  ;;  %v419_v39 = vpop.f32.mrb[13].mxu0  ;;  %v459_v40 = vpop.f32.mrb[13].mxu1 }
 0x11e   : > { %483 = vst [vmem:[%s1044_s15 + $0x68] sm:$0xff] %v419_v39  ;;  %499 = vst [vmem:[%s1044_s15 + $0xe8] sm:$0xff] %v459_v40  ;;  %v421_v41 = vpop.f32.mrb[14].mxu0  ;;  %v461_v42 = vpop.f32.mrb[14].mxu1 }
 0x11f   : > { %484 = vst [vmem:[%s1044_s15 + $0x70] sm:$0xff] %v421_v41  ;;  %500 = vst [vmem:[%s1044_s15 + $0xf0] sm:$0xff] %v461_v42  ;;  %v423_v43 = vpop.f32.mrb[15].mxu0  ;;  %v463_v44 = vpop.f32.mrb[15].mxu1 }
 0x120   : > { %485 = vst [vmem:[%s1044_s15 + $0x78] sm:$0xff] %v423_v43  ;;  %501 = vst [vmem:[%s1044_s15 + $0xf8] sm:$0xff] %v463_v44 }
 0x121   : > { %863 = shalt.err (!%p860_p11)
}
 0x122   : > { %s864_s7 = scalar_lea.hbm %s1077_s27, 4096  ;;  %s868_s10 = scalar_lea.hbm %s1138_s3, 8192 }
 0x123   : > { %p865_p12 = scmp.ne.s32.totalorder %s1077_s27, %s864_s7  ;;  %p869_p2 = scmp.lt.u32.totalorder %s1077_s27, %s1138_s3 }
 0x124   : > { %p870_p3 = scmp.lt.u32.totalorder %s868_s10, %s864_s7  ;;  %p872_p5 = scmp.lt.u32.totalorder %s864_s7, %s1077_s27 }
 0x125   : > { %p866_p0 = pnand %p865_p12, %p1000_p9 }
 0x126   : > { %p871_p4 = por %p870_p3, %p869_p2 }
 0x127   : > { %p867_p1 = pneg %p866_p0 }
 0x128   : > { %p873_p6 = por %p872_p5, %p871_p4 }
 0x12a   : > { %p874_p7 = pnand %p873_p6, %p867_p1 }
 0x12c   : > { %877 = shalt.err (!%p874_p7)
}
 0x12d   : > { %s935_s13 = smov 256   ;;  %s936_s14 = smov 16  }
 0x12e   : > { %765 = dma.vmem_to_hbm [thread:$0]  (%p1000_p9), %s1079_s22, 4096, %s1077_s27, %s1089_s19, %s935_s13, %s935_s13, %s936_s14  }
 0x12f PF: > { %p771_p8 = scmp.ge.s32.totalorder %s930_s21, 2  ;;  %s634_s15 = sand.u32 1, %s910_s17  }
 0x130   : > { %s635_s16 = scalar_lea.sflag [#allocation5], %s634_s15 }
 0x131   : > { %p768_p10 = pnand %p771_p8, %p1007_p13 }
 0x133   : > { %905 = dma.done.wait (!%p768_p10), %s635_s16, 4096  }
 0x134   : > { %907 = vsyncadd (!%p768_p10), %s635_s16, 4294963200  ;;  %s22_s21 = sadd.s32 1, %s930_s21   ;;  %s1141_s17 = smov %s914_s18 }
 0x135   : > { %p19_p11 = scmp.ge.s32.totalorder %s22_s21, 4   ;;  %s1142_s18 = smov %s918_s0 }
 0x136   : > { %s1143_s0 = smov %s1013_s29  ;;  %s1144_s19 = smov %s926_s20 }
 0x137   : > { %s1145_s20 = smov %s1147_s24  ;;  %21 = sbr.rel (!%p19_p11) target bundleno = 19 (0x13), region = 74 }
 0x13e   :  { %640 = vsyncpa [#allocation5], 1 }
 0x13f   :  { %642 = vsyncpa [#allocation5 + $0x1], 1 }

</bundles_post_ra>
